<compile_context>
chip_gen: v5e
topology: v5e:2x2
jax: 0.10.0
libtpu: 0.0.40
codegen_flags: <defaults>
</compile_context>

<pallas_src>
import jax
import jax.numpy as jnp
from jax.experimental import pallas as pl
from jax.experimental.pallas import tpu as pltpu


def _round_up(n, m):
    return ((n + m - 1) // m) * m


def _rezero_conv1x1_kernel(x_ref, w_ref, b_ref, o_ref):
    # x_ref: (b_blk, C, t) spatial tile; w_ref: (C, C) = g*W; b_ref: (C, 1) = g*b
    w = w_ref[...]
    bias = b_ref[...]
    # Static, small unrolled loop over the batch rows packed into this block.
    # (Kernel is HBM-bound at any realistic C, so the MXU path is fine even for
    #  tiny C; a VPU broadcast-FMA alternative would not change wall clock.)
    for i in range(x_ref.shape[0]):
        y = jnp.dot(w, x_ref[i], preferred_element_type=jnp.float32)
        o_ref[i] = (y + bias).astype(o_ref.dtype)


def _choose_tiling(B, C, HW, itemsize):
    """Byte-sized block selection + generation-aware VMEM budget."""
    sub = 8 * max(1, 4 // itemsize)            # sublane multiple: 8 f32, 16 bf16
    c_pad = _round_up(C, sub)                  # honest (sublane-padded) channel rows
    hw_pad = _round_up(HW, 128)                # pad ONLY to the next 128 lanes

    # Generation-aware VMEM budget (v7x: 64 MiB physical -> ~40 MiB; v5e/v6e: ~96 MiB).
    try:
        vmem_cap = pltpu.get_tpu_info().vmem_capacity_bytes
    except Exception:                          # interpret mode / unknown chip
        vmem_cap = 64 << 20
    hard_cap = (40 << 20) if vmem_cap <= (64 << 20) else (96 << 20)

    # Target ~4 MiB per block; 2x in + 2x out double buffers must stay under cap.
    target_block_bytes = min(4 << 20, max(c_pad * 128 * itemsize, hard_cap // 6))
    col_bytes = c_pad * itemsize               # bytes per single-lane column

    # Largest multiple-of-128 divisor of hw_pad whose per-batch-row block fits.
    t = 128
    for cand in range(128, hw_pad + 1, 128):
        if hw_pad % cand == 0 and cand * col_bytes <= target_block_bytes:
            t = cand

    # Pack several batch rows per block when a single row is still small.
    b_blk = 1
    for cand in range(1, B + 1):
        if B % cand == 0 and cand * t * col_bytes <= target_block_bytes:
            b_blk = cand

    # Keep >= 2 grid blocks whenever possible so v7x's two TensorCores split work.
    if (B // b_blk) * (hw_pad // t) < 2:
        if B >= 2:
            b_blk = max(d for d in range(1, B // 2 + 1) if B % d == 0)
        elif hw_pad >= 256:
            t = max(d for d in range(128, hw_pad // 2 + 1, 128) if hw_pad % d == 0)

    # Honest VMEM estimate (sublane padding included) -> explicit limit.
    blk_bytes = b_blk * c_pad * t * itemsize
    w_bytes = c_pad * _round_up(C, 128) * itemsize
    b_bytes = _round_up(C, 8) * 128 * 4
    vmem_needed = 4 * blk_bytes + 2 * (w_bytes + b_bytes)
    vmem_limit = int(min(hard_cap, max(2 * vmem_needed, 16 << 20)))
    return t, b_blk, hw_pad, vmem_limit


@jax.jit
def rezero_forward(x_nchw, w, b, g):
    """y = conv1x1(x; w, b) * g  with x in NCHW; returns NCHW."""
    B, C, H, W = x_nchw.shape
    HW = H * W
    itemsize = jnp.dtype(x_nchw.dtype).itemsize

    t, b_blk, hw_pad, vmem_limit = _choose_tiling(B, C, HW, itemsize)

    # NCHW -> (B, C, HW): contiguous reshape, no transpose / extra HBM pass.
    x3 = x_nchw.reshape(B, C, HW)
    if hw_pad != HW:                            # only up to the next 128 lanes
        x3 = jnp.pad(x3, ((0, 0), (0, 0), (0, hw_pad - HW)))

    # Fold the rezero gate into the (tiny) conv parameters outside the kernel.
    g_f32 = jnp.asarray(g, jnp.float32).reshape(())
    w_g = (w.reshape(C, C).astype(jnp.float32) * g_f32).astype(x3.dtype)
    b_g = b.reshape(C, 1).astype(jnp.float32) * g_f32

    grid = (B // b_blk, hw_pad // t)

    cost = pl.CostEstimate(
        flops=2 * B * C * C * HW,
        transcendentals=0,
        bytes_accessed=(2 * B * C * HW + C * C + C) * itemsize,
    )

    out3 = pl.pallas_call(
        _rezero_conv1x1_kernel,
        out_shape=jax.ShapeDtypeStruct((B, C, hw_pad), x3.dtype),
        grid_spec=pltpu.PrefetchScalarGridSpec(
            num_scalar_prefetch=0,
            grid=grid,
            in_specs=[
                pl.BlockSpec((b_blk, C, t), lambda bi, si: (bi, 0, si)),  # x tile
                pl.BlockSpec((C, C), lambda bi, si: (0, 0)),              # g * W
                pl.BlockSpec((C, 1), lambda bi, si: (0, 0)),              # g * b
            ],
            out_specs=pl.BlockSpec((b_blk, C, t), lambda bi, si: (bi, 0, si)),
        ),
        compiler_params=pltpu.CompilerParams(
            dimension_semantics=("parallel", "parallel"),
            vmem_limit_bytes=vmem_limit,
        ),
        cost_estimate=cost,
    )(x3, w_g, b_g)

    if hw_pad != HW:
        out3 = out3[:, :, :HW]
    return out3.reshape(B, C, H, W)


if __name__ == "__main__":
    key = jax.random.PRNGKey(0)
    B, C, H, W = 2, 4, 16, 16

    kx, kw, kb = jax.random.split(key, 3)
    x = jax.random.normal(kx, (B, C, H, W), dtype=jnp.float32)

    # Deterministic synthetic parameters:
    #   fn = Conv2d(C, C, kernel_size=1) -> weight (C, C, 1, 1), bias (C,)
    #   g  = torch.zeros(1)              -> rezero gate, init 0
    w = jax.random.normal(kw, (C, C, 1, 1), dtype=jnp.float32) * 0.1
    b = jax.random.normal(kb, (C,), dtype=jnp.float32) * 0.1
    g = jnp.zeros((1,), dtype=jnp.float32)

    y = jax.block_until_ready(rezero_forward(x, w, b, g))
    ref = (jnp.einsum("bchw,oc->bohw", x, w.reshape(C, C)) +
           b.reshape(1, C, 1, 1)) * g[0]
    assert y.shape == (B, C, H, W)
    assert jnp.allclose(y, ref, atol=1e-5, rtol=1e-5)

    # Nonzero gate so the full compute path is exercised.
    g2 = jnp.full((1,), 0.37, dtype=jnp.float32)
    y2 = jax.block_until_ready(rezero_forward(x, w, b, g2))
    ref2 = (jnp.einsum("bchw,oc->bohw", x, w.reshape(C, C)) +
            b.reshape(1, C, 1, 1)) * g2[0]
    assert jnp.allclose(y2, ref2, atol=1e-5, rtol=1e-5)

    print("KERNEL_OK")
</pallas_src>

<mosaic_0001>
module attributes {stable_mosaic.version = 11 : i64} {
  func.func @_rezero_conv1x1_kernel(%arg0: i32, %arg1: i32, %arg2: memref<1x4x256xf32, #tpu.memory_space<vmem>>, %arg3: memref<4x4xf32, #tpu.memory_space<vmem>>, %arg4: memref<4x1xf32, #tpu.memory_space<vmem>>, %arg5: memref<1x4x256xf32, #tpu.memory_space<vmem>>) attributes {dimension_semantics = [#tpu.dimension_semantics<parallel>, #tpu.dimension_semantics<parallel>], iteration_bounds = array<i64: 2, 1>, scalar_prefetch = 0 : i64, scratch_operands = 0 : i64, tpu.core_type = #tpu.core_type<tc>, window_params = [{transform_indices = @transform_0, window_bounds = array<i64: 1, 4, 256>}, {pipeline_mode = #tpu.pipeline_mode<synchronous>, transform_indices = @transform_1, window_bounds = array<i64: 4, 4>}, {pipeline_mode = #tpu.pipeline_mode<synchronous>, transform_indices = @transform_2, window_bounds = array<i64: 4, 1>}, {transform_indices = @transform_3, window_bounds = array<i64: 1, 4, 256>}]} {
    %c0 = arith.constant 0 : index
    %c0_0 = arith.constant 0 : index
    %0 = vector.load %arg3[%c0, %c0_0] : memref<4x4xf32, #tpu.memory_space<vmem>>, vector<4x4xf32>
    %c0_1 = arith.constant 0 : index
    %c0_2 = arith.constant 0 : index
    %1 = vector.load %arg4[%c0_1, %c0_2] : memref<4x1xf32, #tpu.memory_space<vmem>>, vector<4x1xf32>
    %c0_3 = arith.constant 0 : index
    %c0_4 = arith.constant 0 : index
    %c0_5 = arith.constant 0 : index
    %2 = vector.load %arg2[%c0_3, %c0_4, %c0_5] : memref<1x4x256xf32, #tpu.memory_space<vmem>>, vector<1x4x256xf32>
    %3 = vector.shape_cast %2 : vector<1x4x256xf32> to vector<4x256xf32>
    %cst = arith.constant dense<0.000000e+00> : vector<4x256xf32>
    %4 = tpu.matmul %0, %3, %cst {dimension_numbers = #tpu.dot_dimension_numbers<[1], [0], [0], [1], [0, 0, 1, 1], [], []>} : vector<4x4xf32>, vector<4x256xf32>, vector<4x256xf32> -> vector<4x256xf32>
    %5 = vector.broadcast %1 : vector<4x1xf32> to vector<4x256xf32>
    %6 = arith.addf %4, %5 : vector<4x256xf32>
    %c0_6 = arith.constant 0 : index
    %c0_7 = arith.constant 0 : index
    %c0_8 = arith.constant 0 : index
    %7 = vector.load %arg5[%c0_6, %c0_7, %c0_8] : memref<1x4x256xf32, #tpu.memory_space<vmem>>, vector<1x4x256xf32>
    %8 = vector.shape_cast %7 : vector<1x4x256xf32> to vector<4x256xf32>
    %9 = vector.shape_cast %6 : vector<4x256xf32> to vector<1x4x256xf32>
    tpu.vector_store %arg5[%c0_6, %c0_7, %c0_8], %9 {strides = array<i32>} : memref<1x4x256xf32, #tpu.memory_space<vmem>>, vector<1x4x256xf32>,
    return
  }
  func.func @transform_0(%arg0: i32, %arg1: i32) -> (i32, i32, i32) {
    %c0_i32 = arith.constant 0 : i32
    %c0_i32_0 = arith.constant 0 : i32
    return %arg0, %c0_i32, %arg1 : i32, i32, i32
  }
  func.func @transform_1(%arg0: i32, %arg1: i32) -> (i32, i32) {
    %c0_i32 = arith.constant 0 : i32
    %c0_i32_0 = arith.constant 0 : i32
    %c0_i32_1 = arith.constant 0 : i32
    return %c0_i32, %c0_i32_0 : i32, i32
  }
  func.func @transform_2(%arg0: i32, %arg1: i32) -> (i32, i32) {
    %c0_i32 = arith.constant 0 : i32
    %c0_i32_0 = arith.constant 0 : i32
    %c0_i32_1 = arith.constant 0 : i32
    return %c0_i32, %c0_i32_0 : i32, i32
  }
  func.func @transform_3(%arg0: i32, %arg1: i32) -> (i32, i32, i32) {
    %c0_i32 = arith.constant 0 : i32
    %c0_i32_0 = arith.constant 0 : i32
    return %arg0, %c0_i32, %arg1 : i32, i32, i32
  }
}

</mosaic_0001>

<bundles_post_ra>
// kernel: rezero_forward.1
= control target key start
LH: loop header
LB: loop body
LE: loop exit
PB: predicated region body
PF: predicated region fallthrough
CT: control target
= control target key end

     0   :  { %s452_s12 = smov 0   ;;  %s454_s13 = smov 0   ;;  %s494_s0 = inlined_call_operand.vmem [shape: f32[2,4,256], index: 0, kind: input, shape index: {}]   ;;  %s495_s1 = inlined_call_operand.vmem [shape: f32[4,4], index: 1, kind: input, shape index: {}]   ;;  %s496_s2 = inlined_call_operand.vmem [shape: f32[4,1], index: 2, kind: input, shape index: {}]   ;;  %s497_s3 = inlined_call_operand.vmem [shape: f32[2,4,256], index: 3, kind: output, shape index: {}]  }
   0x1   :  { %s456_s14 = smov 0  }
   0x2 LB: > { %s25_s15 = sadd.s32 1, %s425_s13  ;;  %p368_p0 = scmp.ge.s32.totalorder %s429_s14, 1  ;;  %s429_s14 = sphi %s456_s14, %s13_s14   ;;  %s425_s13 = sphi %s454_s13, %s499_s13   ;;  %s421_s12 = sphi %s452_s12, %s498_s12  }
   0x3   : > { %p27_p1 = scmp.ge.s32.totalorder %s25_s15, 2  ;;  %p158_p2 = scmp.lt.s32.totalorder %s429_s14, 3 }
   0x5   : > { %s501_s15 = smov (%p27_p1, %s25_s15), 0  ;;  %p159_p3 = pnand %p368_p0, %p158_p2 }
   0x6   : > { %p191_p4 = scmp.lt.s32.totalorder (!%p159_p3), %s421_s12, 1 }
   0x7   : > { %162 = sbr.rel (%p159_p3) target bundleno = 157 (0x9d), region = 32 }
   0xc   : > { %v431_v0 = vmov 0   ;;  %v211_v1 = vld [vmem:[%s496_s2] sm:$0xf]  ;;  %s503_s12 = smov (!%p191_p4, %s421_s12), 1  ;;  %vm226_vm0 = vcmask 1043456   ;;  %vm222_vm1 = vcmask 31744  }
   0xd   : > { %406 = vset.pattern.permute.xlu0 %v431_v0  ;;  %s379_s18 = sshll.u32 %s503_s12, 3  ;;  %v210_v3 = vld [vmem:[%s495_s1] sm:$0xf] }
   0xe   : > { %215 = vperm.xlu0 %406, %v211_v1   ;;  %s198_s21 = scalar_lea.vmem %s494_s0, %s379_s18  ;;  %s208_s26 = scalar_lea.vmem %s497_s3, %s379_s18 }
   0xf   : > { %v212_v2 = vld [vmem:[%s198_s21] sm:$0xff] }
  0x10   : > { %219 = vst [vmem:[#allocation1] ss:$2 sm:$0xff] %v212_v2 }
  0x17   : > { %v220_v4 = vld.sshfl [vmem:[#allocation1] sm:$0xff pattern:$0x75316420]  ;;  %v221_v5 = vld.sshfl [vmem:[#allocation1 + $0x8] sm:$0xff pattern:$0x75316420] }
  0x18   : > { %373 = vmatpush.msk.msra.mxu0 %vm226_vm0, %v220_v4  ;;  %375 = vmatpush.msk.msra.mxu1 %vm226_vm0, %v221_v5 }
  0x19   : > { %374 = vmatmul.msk.f32.vlgmr.msra.gmra.mxu0 %vm222_vm1, %v210_v3  ;;  %376 = vmatmul.msk.f32.vlgmr.msra.gmra.mxu1 %vm222_vm1, %v210_v3 }
  0x80   : > { %v216_v6 = vpop.permute.xlu0 %215 }
  0x96   : > { %v248_v7 = vpop.f32.mrf.mxu0  ;;  %v268_v8 = vpop.f32.mrf.mxu1 }
  0x97   : > { %v269_v9 = vadd.f32 %v268_v8, %v216_v6  ;;  %v249_v10 = vadd.f32 %v248_v7, %v216_v6 }
  0x99   : > { %v273_v11 = vrot.slane %v269_v9, 4 }
  0x9b   : > { %v274_v12 = vsel %vm226_vm0, %v249_v10, %v273_v11 }
  0x9c   : > { %276 = vst [vmem:[%s208_s26] sm:$0xff] %v274_v12 }
  0x9d PF: > { %s13_s14 = sadd.s32 1, %s429_s14   ;;  %s498_s12 = smov %s425_s13 }
  0x9e   : > { %p10_p5 = scmp.ge.s32.totalorder %s13_s14, 4   ;;  %s499_s13 = smov %s501_s15 }
  0xa0   :  { %12 = sbr.rel (!%p10_p5) target bundleno = 2 (0x2), region = 62 }

</bundles_post_ra>
